<compile_context>
chip_gen: v7x
topology: tpu7x:2x2x1
jax: 0.10.0
libtpu: 0.0.40
codegen_flags: <defaults>
</compile_context>

<pallas_src>
import jax
import jax.numpy as jnp
from jax.experimental import pallas as pl
from jax.experimental.pallas import tpu as pltpu


_LANE = 128
_SUBLANE = 8


def _round_up(x, m):
    return ((x + m - 1) // m) * m


def _vmem_capacity_bytes():
    """Generation-aware VMEM capacity, with a conservative fallback."""
    try:
        info = pltpu.get_tpu_info()
        cap = int(getattr(info, "vmem_capacity_bytes", 0))
        if cap > 0:
            return cap
    except Exception:
        pass
    return 64 << 20  # conservative: v7x per-TensorCore VMEM


def _make_fmlp_kernel(num_layers, tanh_flags):
    """Kernel computing a chain of (matmul + bias [+ tanh]) layers."""

    def kernel(*refs):
        x_ref = refs[0]
        out_ref = refs[-1]
        param_refs = refs[1:-1]  # (W0, b0, W1, b1, ...)

        h = x_ref[...]
        for li in range(num_layers):
            w = param_refs[2 * li][...]        # compute dtype (f32 or bf16)
            b = param_refs[2 * li + 1][...]    # f32
            lhs = h if h.dtype == w.dtype else h.astype(w.dtype)
            h = jnp.dot(lhs, w, preferred_element_type=jnp.float32) + b
            if tanh_flags[li]:
                h = jnp.tanh(h)
        # Only column 0 of the lane-padded last layer is real output; write a
        # dense [tb, 1] tile so the HBM writeback carries no dead lanes.
        out_ref[...] = h[:, 0:1].astype(out_ref.dtype)

    return kernel


def build_fmlp_forward(layer_params, transfer_off=True,
                       compute_dtype=jnp.float32, block_batch=None,
                       single_buffer_weights=True):
    """Pack FMLP parameters once and return a forward(x) closure.

    Args:
      layer_params: list of (W, b) with W of shape [in, out], b of shape [out].
                    Ordering: fc_in, *hidden_layers, fc_out.
      transfer_off: if True, no activation after fc_in (PyTorch default).
      compute_dtype: MXU operand dtype (f32 for bit-parity, bf16 for speed on
                     v6e/v7x).  Accumulation / bias add / tanh stay f32.
      block_batch: optional batch-tile override (rounded up to 8).
      single_buffer_weights: request Buffered(1) on the resident weight specs.

    Returns:
      forward(x: [batch, input_size] f32) -> [batch, 1] f32
    """
    num_layers = len(layer_params)
    if num_layers == 1:  # degenerate guard; FMLP always has >= 2 layers
        tanh_flags = [not transfer_off]
    else:
        tanh_flags = [not transfer_off] + [True] * (num_layers - 2) + [False]

    in_dim = int(layer_params[0][0].shape[0])
    dims = [in_dim] + [int(w.shape[1]) for (w, _) in layer_params]
    # Input width stays natural (sublane-rounded only); hidden/output widths
    # are lane-padded (multiple of 128).
    dims_pad = ([_round_up(in_dim, _SUBLANE)]
                + [_round_up(d, _LANE) for d in dims[1:]])
    compute_itemsize = jnp.dtype(compute_dtype).itemsize

    # --- Pack (pad + cast) parameters ONCE at build time. ---
    packed_params = []
    weight_bytes = 0
    for li, (w, b) in enumerate(layer_params):
        ip, op = dims_pad[li], dims_pad[li + 1]
        w = jnp.asarray(w, jnp.float32)
        b = jnp.asarray(b, jnp.float32)
        w_p = jnp.zeros((ip, op), jnp.float32).at[:w.shape[0], :w.shape[1]].set(w)
        b_p = jnp.zeros((1, op), jnp.float32).at[0, :b.shape[0]].set(b)
        packed_params.append(w_p.astype(compute_dtype))  # MXU operand dtype
        packed_params.append(b_p)                        # bias stays f32
        weight_bytes += ip * op * compute_itemsize + op * 4
    packed_params = [jax.block_until_ready(p) for p in packed_params]

    kernel = _make_fmlp_kernel(num_layers, tanh_flags)

    in_pad = dims_pad[0]
    max_w = max(dims_pad)
    vmem_cap = _vmem_capacity_bytes()
    budget = int(vmem_cap * 0.70)

    # Per batch-row VMEM bytes: double-buffered input tile + double-buffered
    # [tb, 1] output tile + ~3 live f32 intermediate activation rows.
    per_row = 2 * compute_itemsize * in_pad + 2 * 4 + 3 * 4 * max_w
    # Count weights at 2 buffers (the no-pipeline_mode fallback path).
    resident_weight_bytes = 2 * weight_bytes

    def forward(x):
        batch, xin = x.shape
        if xin != in_dim:
            raise ValueError(f"expected input width {in_dim}, got {xin}")

        avail = budget - resident_weight_bytes
        if avail < per_row * _SUBLANE:
            # TODO(synk): N-tile huge weight layers instead of collapsing tb.
            avail = per_row * _SUBLANE
        if block_batch is None:
            tb = (avail // per_row) // _SUBLANE * _SUBLANE
        else:
            tb = _round_up(int(block_batch), _SUBLANE)
        tb = max(_SUBLANE, min(int(tb), 2048))
        tb = min(tb, _round_up(batch, _SUBLANE))
        # Keep >= 2 grid steps once the batch is large, so ("parallel",) can
        # shard across v7x's two TensorCores (no-op on v5e/v6e).
        if batch >= 2 * _LANE:
            tb = min(tb, _round_up((batch + 1) // 2, _SUBLANE))
        tb = max(tb, _SUBLANE)
        batch_pad = _round_up(batch, tb)

        # Input already in compute dtype at its natural (8-rounded) width.
        if ((batch_pad, in_pad) == tuple(x.shape)
                and x.dtype == jnp.dtype(compute_dtype)):
            x_p = x
        else:
            x_p = jnp.zeros((batch_pad, in_pad), compute_dtype)
            x_p = x_p.at[:batch, :in_dim].set(x.astype(compute_dtype))

        grid = (batch_pad // tb,)
        x_spec = pl.BlockSpec((tb, in_pad), lambda i: (i, 0))
        out_spec = pl.BlockSpec((tb, 1), lambda i: (i, 0))

        flops = sum(2 * batch_pad * dims_pad[li] * dims_pad[li + 1]
                    for li in range(num_layers))
        transcendentals = sum(batch_pad * dims_pad[li + 1]
                              for li in range(num_layers) if tanh_flags[li])
        bytes_accessed = (batch_pad * in_pad * compute_itemsize
                          + weight_bytes + batch_pad * 4)
        cost = pl.CostEstimate(flops=int(flops),
                               transcendentals=int(transcendentals),
                               bytes_accessed=int(bytes_accessed))

        vmem_estimate = resident_weight_bytes + tb * per_row + (4 << 20)
        vmem_limit = int(min(max(vmem_estimate, 32 << 20),
                             int(vmem_cap * 0.9)))
        cparams = pltpu.CompilerParams(
            dimension_semantics=("parallel",),
            vmem_limit_bytes=vmem_limit,
        )

        def call(single_buffer):
            w_specs = []
            for arr in packed_params:
                if single_buffer:
                    w_specs.append(pl.BlockSpec(arr.shape, lambda i: (0, 0),
                                                pipeline_mode=pl.Buffered(1)))
                else:
                    w_specs.append(pl.BlockSpec(arr.shape, lambda i: (0, 0)))
            return pl.pallas_call(
                kernel,
                out_shape=jax.ShapeDtypeStruct((batch_pad, 1), jnp.float32),
                grid=grid,
                in_specs=[x_spec] + w_specs,
                out_specs=out_spec,
                compiler_params=cparams,
                cost_estimate=cost,
            )(x_p, *packed_params)

        if single_buffer_weights:
            try:
                out_p = jax.block_until_ready(call(True))
            except Exception:
                # Installed Pallas may require buffer_count >= 2; fall back.
                out_p = call(False)
        else:
            out_p = call(False)

        return out_p[:batch]  # [batch, 1]

    return forward


def _init_fmlp_params(key, input_size, hidden_sizes):
    """PyTorch-style init: U(-1/sqrt(fan_in), 1/sqrt(fan_in)).

    Returns list of (W [in, out], b [out]) for fc_in, hidden layers, fc_out.
    """
    dims = [input_size] + list(hidden_sizes) + [1]
    params = []
    for in_d, out_d in zip(dims[:-1], dims[1:]):
        key, kw, kb = jax.random.split(key, 3)
        bound = 1.0 / jnp.sqrt(jnp.float32(in_d))
        w = jax.random.uniform(kw, (in_d, out_d), jnp.float32, -bound, bound)
        b = jax.random.uniform(kb, (out_d,), jnp.float32, -bound, bound)
        params.append((w, b))
    return params


def _reference_forward(x, layer_params, transfer_off=True):
    """Pure-JAX reference mirroring FMLP.forward (f32 throughout)."""
    num_layers = len(layer_params)
    tanh_flags = [not transfer_off] + [True] * (num_layers - 2) + [False]
    h = x
    for (w, b), do_tanh in zip(layer_params, tanh_flags):
        h = h @ w + b
        if do_tanh:
            h = jnp.tanh(h)
    return h


if __name__ == "__main__":
    # Small shapes consistent with FMLP(input_size, hidden_sizes): regression
    # MLP on flat feature vectors, output dim 1.
    batch = 8
    input_size = 16
    hidden_sizes = [32, 32]

    key = jax.random.PRNGKey(0)
    key, kx = jax.random.split(key)
    x = jax.random.normal(kx, (batch, input_size), jnp.float32)

    params = _init_fmlp_params(key, input_size, hidden_sizes)
    ref = _reference_forward(x, params, transfer_off=True)

    # f32 MXU operands: bit-faithful to the PyTorch forward (tight tolerance).
    fwd_f32 = build_fmlp_forward(params, transfer_off=True,
                                 compute_dtype=jnp.float32)
    out_f32 = jax.block_until_ready(fwd_f32(x))
    assert out_f32.shape == (batch, 1), out_f32.shape
    assert jnp.allclose(out_f32, ref, atol=1e-5, rtol=1e-5), (
        "f32 mismatch vs reference", out_f32, ref)

    # bf16 MXU operands (f32 accumulation): the production-perf path on
    # v6e/v7x; small numeric delta vs the f32 reference is expected.
    fwd_bf16 = build_fmlp_forward(params, transfer_off=True,
                                  compute_dtype=jnp.bfloat16)
    out_bf16 = jax.block_until_ready(fwd_bf16(x))
    assert out_bf16.shape == (batch, 1), out_bf16.shape
    assert jnp.allclose(out_bf16, ref, atol=5e-2, rtol=5e-2), (
        "bf16 mismatch vs reference", out_bf16, ref)

    print("KERNEL_OK")
</pallas_src>

<mosaic_0001>
module attributes {stable_mosaic.version = 11 : i64} {
  func.func @kernel(%arg0: i32, %arg1: memref<8x16xf32, #tpu.memory_space<vmem>>, %arg2: memref<16x128xf32, #tpu.memory_space<vmem>>, %arg3: memref<1x128xf32, #tpu.memory_space<vmem>>, %arg4: memref<128x128xf32, #tpu.memory_space<vmem>>, %arg5: memref<1x128xf32, #tpu.memory_space<vmem>>, %arg6: memref<128x128xf32, #tpu.memory_space<vmem>>, %arg7: memref<1x128xf32, #tpu.memory_space<vmem>>, %arg8: memref<8x1xf32, #tpu.memory_space<vmem>>) attributes {dimension_semantics = [#tpu.dimension_semantics<parallel>], iteration_bounds = array<i64: 1>, scalar_prefetch = 0 : i64, scratch_operands = 0 : i64, tpu.core_type = #tpu.core_type<tc>, window_params = [{transform_indices = @transform_0, window_bounds = array<i64: 8, 16>}, {pipeline_mode = #tpu.pipeline_mode<synchronous>, transform_indices = @transform_1, window_bounds = array<i64: 16, 128>}, {pipeline_mode = #tpu.pipeline_mode<synchronous>, transform_indices = @transform_2, window_bounds = array<i64: 1, 128>}, {pipeline_mode = #tpu.pipeline_mode<synchronous>, transform_indices = @transform_3, window_bounds = array<i64: 128, 128>}, {pipeline_mode = #tpu.pipeline_mode<synchronous>, transform_indices = @transform_4, window_bounds = array<i64: 1, 128>}, {pipeline_mode = #tpu.pipeline_mode<synchronous>, transform_indices = @transform_5, window_bounds = array<i64: 128, 128>}, {pipeline_mode = #tpu.pipeline_mode<synchronous>, transform_indices = @transform_6, window_bounds = array<i64: 1, 128>}, {transform_indices = @transform_7, window_bounds = array<i64: 8, 1>}]} {
    %c0 = arith.constant 0 : index
    %c0_0 = arith.constant 0 : index
    %0 = vector.load %arg1[%c0, %c0_0] : memref<8x16xf32, #tpu.memory_space<vmem>>, vector<8x16xf32>
    %c0_1 = arith.constant 0 : index
    %c0_2 = arith.constant 0 : index
    %1 = vector.load %arg2[%c0_1, %c0_2] : memref<16x128xf32, #tpu.memory_space<vmem>>, vector<16x128xf32>
    %c0_3 = arith.constant 0 : index
    %c0_4 = arith.constant 0 : index
    %2 = vector.load %arg3[%c0_3, %c0_4] : memref<1x128xf32, #tpu.memory_space<vmem>>, vector<1x128xf32>
    %cst = arith.constant dense<0.000000e+00> : vector<8x128xf32>
    %3 = tpu.matmul %0, %1, %cst {dimension_numbers = #tpu.dot_dimension_numbers<[1], [0], [0], [1], [0, 0, 1, 1], [], []>} : vector<8x16xf32>, vector<16x128xf32>, vector<8x128xf32> -> vector<8x128xf32>
    %4 = vector.broadcast %2 : vector<1x128xf32> to vector<8x128xf32>
    %5 = arith.addf %3, %4 : vector<8x128xf32>
    %c0_5 = arith.constant 0 : index
    %c0_6 = arith.constant 0 : index
    %6 = vector.load %arg4[%c0_5, %c0_6] : memref<128x128xf32, #tpu.memory_space<vmem>>, vector<128x128xf32>
    %c0_7 = arith.constant 0 : index
    %c0_8 = arith.constant 0 : index
    %7 = vector.load %arg5[%c0_7, %c0_8] : memref<1x128xf32, #tpu.memory_space<vmem>>, vector<1x128xf32>
    %cst_9 = arith.constant dense<0.000000e+00> : vector<8x128xf32>
    %8 = tpu.matmul %5, %6, %cst_9 {dimension_numbers = #tpu.dot_dimension_numbers<[1], [0], [0], [1], [0, 0, 1, 1], [], []>} : vector<8x128xf32>, vector<128x128xf32>, vector<8x128xf32> -> vector<8x128xf32>
    %9 = vector.broadcast %7 : vector<1x128xf32> to vector<8x128xf32>
    %10 = arith.addf %8, %9 : vector<8x128xf32>
    %11 = math.tanh %10 : vector<8x128xf32>
    %c0_10 = arith.constant 0 : index
    %c0_11 = arith.constant 0 : index
    %12 = vector.load %arg6[%c0_10, %c0_11] : memref<128x128xf32, #tpu.memory_space<vmem>>, vector<128x128xf32>
    %c0_12 = arith.constant 0 : index
    %c0_13 = arith.constant 0 : index
    %13 = vector.load %arg7[%c0_12, %c0_13] : memref<1x128xf32, #tpu.memory_space<vmem>>, vector<1x128xf32>
    %cst_14 = arith.constant dense<0.000000e+00> : vector<8x128xf32>
    %14 = tpu.matmul %11, %12, %cst_14 {dimension_numbers = #tpu.dot_dimension_numbers<[1], [0], [0], [1], [0, 0, 1, 1], [], []>} : vector<8x128xf32>, vector<128x128xf32>, vector<8x128xf32> -> vector<8x128xf32>
    %15 = vector.broadcast %13 : vector<1x128xf32> to vector<8x128xf32>
    %16 = arith.addf %14, %15 : vector<8x128xf32>
    %17 = vector.extract_strided_slice %16 {offsets = [0, 0], sizes = [8, 1], strides = [1, 1]} : vector<8x128xf32> to vector<8x1xf32>
    %c0_15 = arith.constant 0 : index
    %c0_16 = arith.constant 0 : index
    %18 = vector.load %arg8[%c0_15, %c0_16] : memref<8x1xf32, #tpu.memory_space<vmem>>, vector<8x1xf32>
    tpu.vector_store %arg8[%c0_15, %c0_16], %17 {strides = array<i32>} : memref<8x1xf32, #tpu.memory_space<vmem>>, vector<8x1xf32>,
    return
  }
  func.func @transform_0(%arg0: i32) -> (i32, i32) {
    %c0_i32 = arith.constant 0 : i32
    %c0_i32_0 = arith.constant 0 : i32
    return %arg0, %c0_i32 : i32, i32
  }
  func.func @transform_1(%arg0: i32) -> (i32, i32) {
    %c0_i32 = arith.constant 0 : i32
    %c0_i32_0 = arith.constant 0 : i32
    %c0_i32_1 = arith.constant 0 : i32
    return %c0_i32, %c0_i32_0 : i32, i32
  }
  func.func @transform_2(%arg0: i32) -> (i32, i32) {
    %c0_i32 = arith.constant 0 : i32
    %c0_i32_0 = arith.constant 0 : i32
    %c0_i32_1 = arith.constant 0 : i32
    return %c0_i32, %c0_i32_0 : i32, i32
  }
  func.func @transform_3(%arg0: i32) -> (i32, i32) {
    %c0_i32 = arith.constant 0 : i32
    %c0_i32_0 = arith.constant 0 : i32
    %c0_i32_1 = arith.constant 0 : i32
    return %c0_i32, %c0_i32_0 : i32, i32
  }
  func.func @transform_4(%arg0: i32) -> (i32, i32) {
    %c0_i32 = arith.constant 0 : i32
    %c0_i32_0 = arith.constant 0 : i32
    %c0_i32_1 = arith.constant 0 : i32
    return %c0_i32, %c0_i32_0 : i32, i32
  }
  func.func @transform_5(%arg0: i32) -> (i32, i32) {
    %c0_i32 = arith.constant 0 : i32
    %c0_i32_0 = arith.constant 0 : i32
    %c0_i32_1 = arith.constant 0 : i32
    return %c0_i32, %c0_i32_0 : i32, i32
  }
  func.func @transform_6(%arg0: i32) -> (i32, i32) {
    %c0_i32 = arith.constant 0 : i32
    %c0_i32_0 = arith.constant 0 : i32
    %c0_i32_1 = arith.constant 0 : i32
    return %c0_i32, %c0_i32_0 : i32, i32
  }
  func.func @transform_7(%arg0: i32) -> (i32, i32) {
    %c0_i32 = arith.constant 0 : i32
    %c0_i32_0 = arith.constant 0 : i32
    return %arg0, %c0_i32 : i32, i32
  }
}

module attributes {stable_mosaic.version = 11 : i64} {
  func.func @kernel(%arg0: i32, %arg1: memref<8x16xf32, #tpu.memory_space<vmem>>, %arg2: memref<16x128xf32, #tpu.memory_space<vmem>>, %arg3: memref<1x128xf32, #tpu.memory_space<vmem>>, %arg4: memref<128x128xf32, #tpu.memory_space<vmem>>, %arg5: memref<1x128xf32, #tpu.memory_space<vmem>>, %arg6: memref<128x128xf32, #tpu.memory_space<vmem>>, %arg7: memref<1x128xf32, #tpu.memory_space<vmem>>, %arg8: memref<8x1xf32, #tpu.memory_space<vmem>>) attributes {dimension_semantics = [#tpu.dimension_semantics<parallel>], iteration_bounds = array<i64: 1>, scalar_prefetch = 0 : i64, scratch_operands = 0 : i64, tpu.core_type = #tpu.core_type<tc>, window_params = [{transform_indices = @transform_0, window_bounds = array<i64: 8, 16>}, {pipeline_mode = #tpu.pipeline_mode<synchronous>, transform_indices = @transform_1, window_bounds = array<i64: 16, 128>}, {pipeline_mode = #tpu.pipeline_mode<synchronous>, transform_indices = @transform_2, window_bounds = array<i64: 1, 128>}, {pipeline_mode = #tpu.pipeline_mode<synchronous>, transform_indices = @transform_3, window_bounds = array<i64: 128, 128>}, {pipeline_mode = #tpu.pipeline_mode<synchronous>, transform_indices = @transform_4, window_bounds = array<i64: 1, 128>}, {pipeline_mode = #tpu.pipeline_mode<synchronous>, transform_indices = @transform_5, window_bounds = array<i64: 128, 128>}, {pipeline_mode = #tpu.pipeline_mode<synchronous>, transform_indices = @transform_6, window_bounds = array<i64: 1, 128>}, {transform_indices = @transform_7, window_bounds = array<i64: 8, 1>}]} {
    %c0 = arith.constant 0 : index
    %c0_0 = arith.constant 0 : index
    %0 = vector.load %arg1[%c0, %c0_0] : memref<8x16xf32, #tpu.memory_space<vmem>>, vector<8x16xf32>
    %c0_1 = arith.constant 0 : index
    %c0_2 = arith.constant 0 : index
    %1 = vector.load %arg2[%c0_1, %c0_2] : memref<16x128xf32, #tpu.memory_space<vmem>>, vector<16x128xf32>
    %c0_3 = arith.constant 0 : index
    %c0_4 = arith.constant 0 : index
    %2 = vector.load %arg3[%c0_3, %c0_4] : memref<1x128xf32, #tpu.memory_space<vmem>>, vector<1x128xf32>
    %cst = arith.constant dense<0.000000e+00> : vector<8x128xf32>
    %3 = tpu.matmul %0, %1, %cst {dimension_numbers = #tpu.dot_dimension_numbers<[1], [0], [0], [1], [0, 0, 1, 1], [], []>} : vector<8x16xf32>, vector<16x128xf32>, vector<8x128xf32> -> vector<8x128xf32>
    %4 = vector.broadcast %2 : vector<1x128xf32> to vector<8x128xf32>
    %5 = arith.addf %3, %4 : vector<8x128xf32>
    %c0_5 = arith.constant 0 : index
    %c0_6 = arith.constant 0 : index
    %6 = vector.load %arg4[%c0_5, %c0_6] : memref<128x128xf32, #tpu.memory_space<vmem>>, vector<128x128xf32>
    %c0_7 = arith.constant 0 : index
    %c0_8 = arith.constant 0 : index
    %7 = vector.load %arg5[%c0_7, %c0_8] : memref<1x128xf32, #tpu.memory_space<vmem>>, vector<1x128xf32>
    %cst_9 = arith.constant dense<0.000000e+00> : vector<8x128xf32>
    %8 = tpu.matmul %5, %6, %cst_9 {dimension_numbers = #tpu.dot_dimension_numbers<[1], [0], [0], [1], [0, 0, 1, 1], [], []>} : vector<8x128xf32>, vector<128x128xf32>, vector<8x128xf32> -> vector<8x128xf32>
    %9 = vector.broadcast %7 : vector<1x128xf32> to vector<8x128xf32>
    %10 = arith.addf %8, %9 : vector<8x128xf32>
    %11 = math.tanh %10 : vector<8x128xf32>
    %c0_10 = arith.constant 0 : index
    %c0_11 = arith.constant 0 : index
    %12 = vector.load %arg6[%c0_10, %c0_11] : memref<128x128xf32, #tpu.memory_space<vmem>>, vector<128x128xf32>
    %c0_12 = arith.constant 0 : index
    %c0_13 = arith.constant 0 : index
    %13 = vector.load %arg7[%c0_12, %c0_13] : memref<1x128xf32, #tpu.memory_space<vmem>>, vector<1x128xf32>
    %cst_14 = arith.constant dense<0.000000e+00> : vector<8x128xf32>
    %14 = tpu.matmul %11, %12, %cst_14 {dimension_numbers = #tpu.dot_dimension_numbers<[1], [0], [0], [1], [0, 0, 1, 1], [], []>} : vector<8x128xf32>, vector<128x128xf32>, vector<8x128xf32> -> vector<8x128xf32>
    %15 = vector.broadcast %13 : vector<1x128xf32> to vector<8x128xf32>
    %16 = arith.addf %14, %15 : vector<8x128xf32>
    %17 = vector.extract_strided_slice %16 {offsets = [0, 0], sizes = [8, 1], strides = [1, 1]} : vector<8x128xf32> to vector<8x1xf32>
    %c0_15 = arith.constant 0 : index
    %c0_16 = arith.constant 0 : index
    %18 = vector.load %arg8[%c0_15, %c0_16] : memref<8x1xf32, #tpu.memory_space<vmem>>, vector<8x1xf32>
    tpu.vector_store %arg8[%c0_15, %c0_16], %17 {strides = array<i32>} : memref<8x1xf32, #tpu.memory_space<vmem>>, vector<8x1xf32>,
    return
  }
  func.func @transform_0(%arg0: i32) -> (i32, i32) {
    %c0_i32 = arith.constant 0 : i32
    %c0_i32_0 = arith.constant 0 : i32
    return %arg0, %c0_i32 : i32, i32
  }
  func.func @transform_1(%arg0: i32) -> (i32, i32) {
    %c0_i32 = arith.constant 0 : i32
    %c0_i32_0 = arith.constant 0 : i32
    %c0_i32_1 = arith.constant 0 : i32
    return %c0_i32, %c0_i32_0 : i32, i32
  }
  func.func @transform_2(%arg0: i32) -> (i32, i32) {
    %c0_i32 = arith.constant 0 : i32
    %c0_i32_0 = arith.constant 0 : i32
    %c0_i32_1 = arith.constant 0 : i32
    return %c0_i32, %c0_i32_0 : i32, i32
  }
  func.func @transform_3(%arg0: i32) -> (i32, i32) {
    %c0_i32 = arith.constant 0 : i32
    %c0_i32_0 = arith.constant 0 : i32
    %c0_i32_1 = arith.constant 0 : i32
    return %c0_i32, %c0_i32_0 : i32, i32
  }
  func.func @transform_4(%arg0: i32) -> (i32, i32) {
    %c0_i32 = arith.constant 0 : i32
    %c0_i32_0 = arith.constant 0 : i32
    %c0_i32_1 = arith.constant 0 : i32
    return %c0_i32, %c0_i32_0 : i32, i32
  }
  func.func @transform_5(%arg0: i32) -> (i32, i32) {
    %c0_i32 = arith.constant 0 : i32
    %c0_i32_0 = arith.constant 0 : i32
    %c0_i32_1 = arith.constant 0 : i32
    return %c0_i32, %c0_i32_0 : i32, i32
  }
  func.func @transform_6(%arg0: i32) -> (i32, i32) {
    %c0_i32 = arith.constant 0 : i32
    %c0_i32_0 = arith.constant 0 : i32
    %c0_i32_1 = arith.constant 0 : i32
    return %c0_i32, %c0_i32_0 : i32, i32
  }
  func.func @transform_7(%arg0: i32) -> (i32, i32) {
    %c0_i32 = arith.constant 0 : i32
    %c0_i32_0 = arith.constant 0 : i32
    return %arg0, %c0_i32 : i32, i32
  }
}

</mosaic_0001>

<bundles_post_ra>
// kernel: tpu_custom_call.1
= control target key start
LH: loop header
LB: loop body
LE: loop exit
PB: predicated region body
PF: predicated region fallthrough
CT: control target
= control target key end

     0   :  { %12 = vsyncpa [#allocation3], 0  ;;  %s771_s0 = inlined_call_operand.hbm [shape: f32[8,16], index: 0, kind: input, shape index: {}]   ;;  %s772_s1 = inlined_call_operand.hbm [shape: f32[16,128], index: 1, kind: input, shape index: {}]   ;;  %s773_s2 = inlined_call_operand.vmem [shape: f32[1,128], index: 2, kind: input, shape index: {}]   ;;  %s774_s3 = inlined_call_operand.hbm [shape: f32[128,128], index: 3, kind: input, shape index: {}]   ;;  %s775_s4 = inlined_call_operand.vmem [shape: f32[1,128], index: 4, kind: input, shape index: {}]   ;;  %s776_s5 = inlined_call_operand.hbm [shape: f32[128,128], index: 5, kind: input, shape index: {}]   ;;  %s777_s6 = inlined_call_operand.vmem [shape: f32[1,128], index: 6, kind: input, shape index: {}]   ;;  %s778_s7 = inlined_call_operand.vmem [shape: f32[8,1], index: 7, kind: output, shape index: {}]  }
   0x1   :  { %13 = vsyncpa [#allocation5], 0 }
   0x2   :  { %14 = vsyncpa [#allocation8], 0  ;;  %s633_s24 = smov [#allocation4]   ;;  %s539_s28 = scalar_lea.hbm %s772_s1, 256 }
   0x3   :  { %s30_s25 = sshll.u32 %s633_s24, 4  ;;  %p540_p0 = scmp.ne.s32.totalorder %s772_s1, %s539_s28  ;;  %s31_s25 = int_to_ptr.vmem [resolvable:$true] %s30_s25 }
   0x4   :  { %p543_p1 = scmp.lt.u32.totalorder %s539_s28, %s772_s1 }
   0x6   :  { %p545_p2 = pnand %p543_p1, %p540_p0 }
   0x8   :  { %548 = shalt.err (!%p545_p2)
}
   0x9   :  { %s549_s10 = scalar_lea.vmem %s31_s25, 256  ;;  %p554_p4 = scmp.lt.s32.totalorder %s31_s25, %s31_s25 }
   0xa   :  { %p550_p3 = scmp.ne.s32.totalorder %s31_s25, %s549_s10  ;;  %p555_p5 = scmp.lt.s32.totalorder %s549_s10, %s549_s10 }
   0xc   :  { %p556_p6 = por %p555_p5, %p554_p4 }
   0xe   :  { %p557_p7 = pnand %p556_p6, %p550_p3 }
  0x10   :  { %560 = shalt.err (!%p557_p7)
}
  0x11   :  { %s634_s11 = smov 128   ;;  %s635_s12 = smov 8  }
  0x12   :  { %36 = dma.hbm_to_vmem [thread:$0]  %s772_s1, 256, %s31_s25, [#allocation5], %s634_s11, %s634_s11, %s635_s12  }
  0x13   :  { %s636_s15 = smov [#allocation2]   ;;  %s637_s17 = smov [#allocation6]  }
  0x14   :  { %s21_s16 = sshll.u32 %s636_s15, 4  ;;  %s44_s18 = sshll.u32 %s637_s17, 4  ;;  %s22_s16 = int_to_ptr.vmem [resolvable:$true] %s21_s16  ;;  %s45_s18 = int_to_ptr.vmem [resolvable:$true] %s44_s18 }
  0x15   :  { %s561_s21 = scalar_lea.hbm %s771_s0, 128 }
  0x16   :  { %p562_p8 = scmp.ne.s32.totalorder %s771_s0, %s561_s21  ;;  %p565_p9 = scmp.lt.u32.totalorder %s561_s21, %s771_s0 }
  0x18   :  { %p567_p10 = pnand %p565_p9, %p562_p8 }
  0x1a   :  { %570 = shalt.err (!%p567_p10)
}
  0x1b   :  { %s571_s1 = scalar_lea.vmem %s22_s16, 128  ;;  %p576_p12 = scmp.lt.s32.totalorder %s22_s16, %s22_s16 }
  0x1c   :  { %p572_p11 = scmp.ne.s32.totalorder %s22_s16, %s571_s1  ;;  %p577_p13 = scmp.lt.s32.totalorder %s571_s1, %s571_s1 }
  0x1e   :  { %p578_p0 = por %p577_p13, %p576_p12 }
  0x20   :  { %p579_p1 = pnand %p578_p0, %p572_p11 }
  0x22   :  { %582 = shalt.err (!%p579_p1)
}
  0x23   :  { %24 = dma.hbm_to_vmem [thread:$0]  %s771_s0, 128, %s22_s16, [#allocation3]  }
  0x24   :  { %s583_s30 = scalar_lea.hbm %s774_s3, 2048 }
  0x25   :  { %p584_p2 = scmp.ne.s32.totalorder %s774_s3, %s583_s30  ;;  %p587_p3 = scmp.lt.u32.totalorder %s583_s30, %s774_s3 }
  0x27   :  { %p589_p4 = pnand %p587_p3, %p584_p2 }
  0x29   :  { %592 = shalt.err (!%p589_p4)
}
  0x2a   :  { %s593_s14 = scalar_lea.vmem %s45_s18, 2048  ;;  %p598_p6 = scmp.lt.s32.totalorder %s45_s18, %s45_s18 }
  0x2b   :  { %p594_p5 = scmp.ne.s32.totalorder %s45_s18, %s593_s14  ;;  %p599_p7 = scmp.lt.s32.totalorder %s593_s14, %s593_s14 }
  0x2d   :  { %p600_p8 = por %p599_p7, %p598_p6 }
  0x2f   :  { %p601_p9 = pnand %p600_p8, %p594_p5 }
  0x31   :  { %604 = shalt.err (!%p601_p9)
}
  0x32   :  { %50 = dma.hbm_to_vmem [thread:$0]  %s774_s3, 2048, %s45_s18, [#allocation5], %s634_s11, %s634_s11, %s635_s12  }
  0x33   :  { %s638_s16 = smov [#allocation7]   ;;  %s605_s21 = scalar_lea.hbm %s776_s5, 2048 }
  0x34   :  { %s58_s17 = sshll.u32 %s638_s16, 4  ;;  %p606_p10 = scmp.ne.s32.totalorder %s776_s5, %s605_s21  ;;  %s59_s17 = int_to_ptr.vmem [resolvable:$true] %s58_s17 }
  0x35   :  { %p609_p11 = scmp.lt.u32.totalorder %s605_s21, %s776_s5 }
  0x37   :  { %p611_p12 = pnand %p609_p11, %p606_p10 }
  0x39   :  { %614 = shalt.err (!%p611_p12)
}
  0x3a   :  { %s615_s1 = scalar_lea.vmem %s59_s17, 2048  ;;  %p620_p0 = scmp.lt.s32.totalorder %s59_s17, %s59_s17 }
  0x3b   :  { %p616_p13 = scmp.ne.s32.totalorder %s59_s17, %s615_s1  ;;  %p621_p1 = scmp.lt.s32.totalorder %s615_s1, %s615_s1 }
  0x3d   :  { %p622_p2 = por %p621_p1, %p620_p0 }
  0x3f   :  { %p623_p3 = pnand %p622_p2, %p616_p13 }
  0x41   :  { %626 = shalt.err (!%p623_p3)
}
  0x42   :  { %64 = dma.hbm_to_vmem [thread:$0]  %s776_s5, 2048, %s59_s17, [#allocation8], %s634_s11, %s634_s11, %s635_s12  }
  0x43   :  { %627 = dma.done.wait [#allocation3], 128  }
  0x44   :  { %628 = vsyncadd [#allocation3], 4294967168 }
  0x45   :  { %629 = dma.done.wait [#allocation5], 2304  }
  0x46   :  { %630 = vsyncadd [#allocation5], 4294964992 }
  0x47   :  { %631 = dma.done.wait [#allocation8], 2048  }
  0x48   :  { %632 = vsyncadd [#allocation8], 4294965248  ;;  %v639_v0 = vmov 0.0|0.0   ;;  %vm640_vm0 = vmmov 0   ;;  %v641_v1 = vmov 0.0   ;;  %v80_v2 = vld [vmem:[#allocation4] sm:$0xff] }
  0x49   :  { %477 = vmatprep.subr.bf16.mxu0 %v639_v0  ;;  %404 = vmatprep.mubr.msk.f32.mxu0 %vm640_vm0, %v641_v1  ;;  %v81_v3 = vld [vmem:[#allocation4 + $0x8] sm:$0xff]  ;;  %v163_v5 = vld [vmem:[#allocation6] sm:$0xff]  ;;  %v164_v6 = vld [vmem:[#allocation6 + $0x8] sm:$0xff]  ;;  %vm89_vm1 = vcmask 130048   ;;  %vm350_vm2 = vcmask 7168  }
  0x4a   :  { %480 = vmatprep.subr.bf16.mxu1 %v639_v0  ;;  %439 = vmatprep.mubr.msk.f32.mxu1 %vm640_vm0, %v641_v1  ;;  %v478_v4 = vpack.c.bf16 %v81_v3, %v80_v2  ;;  %v165_v7 = vld [vmem:[#allocation6 + $0x10] sm:$0xff]  ;;  %v481_v8 = vpack.c.bf16 %v164_v6, %v163_v5  ;;  %v166_v9 = vld [vmem:[#allocation6 + $0x18] sm:$0xff]  ;;  %v79_v10 = vld [vmem:[#allocation2] sm:$0xff] }
  0x4b   :  { %v484_v11 = vpack.c.bf16 %v166_v9, %v165_v7  ;;  %v167_v12 = vld [vmem:[#allocation6 + $0x20] sm:$0xff]  ;;  %v168_v13 = vld [vmem:[#allocation6 + $0x28] sm:$0xff]  ;;  %v169_v15 = vld [vmem:[#allocation6 + $0x30] sm:$0xff] }
  0x4c   :  { %479 = vmatpush3.bf16.msra.mxu0 %v478_v4  ;;  %482 = vmatpush3.bf16.msra.mxu1 %v481_v8  ;;  %v487_v14 = vpack.c.bf16 %v168_v13, %v167_v12  ;;  %v170_v16 = vld [vmem:[#allocation6 + $0x38] sm:$0xff]  ;;  %v171_v18 = vld [vmem:[#allocation6 + $0x40] sm:$0xff]  ;;  %v172_v19 = vld [vmem:[#allocation6 + $0x48] sm:$0xff] }
  0x4d   :  { %504 = vmatprep.subr.bf16.mxu0 %v639_v0  ;;  %483 = vmatprep.subr.bf16.mxu1 %v639_v0  ;;  %v490_v17 = vpack.c.bf16 %v170_v16, %v169_v15  ;;  %v493_v20 = vpack.c.bf16 %v172_v19, %v171_v18  ;;  %v173_v21 = vld [vmem:[#allocation6 + $0x50] sm:$0xff]  ;;  %v174_v22 = vld [vmem:[#allocation6 + $0x58] sm:$0xff]  ;;  %v175_v24 = vld [vmem:[#allocation6 + $0x60] sm:$0xff] }
  0x4e   :  { %v496_v23 = vpack.c.bf16 %v174_v22, %v173_v21  ;;  %v176_v25 = vld [vmem:[#allocation6 + $0x68] sm:$0xff]  ;;  %v177_v27 = vld [vmem:[#allocation6 + $0x70] sm:$0xff]  ;;  %v178_v28 = vld [vmem:[#allocation6 + $0x78] sm:$0xff] }
  0x4f   :  { %405 = vmatmul.mubr.msk.f32.vlgmr.msra.gmra.mrb[0].mxu0 %vm89_vm1, %v79_v10  ;;  %v499_v26 = vpack.c.bf16 %v176_v25, %v175_v24  ;;  %v502_v29 = vpack.c.bf16 %v178_v28, %v177_v27  ;;  %v257_v30 = vld [vmem:[#allocation7] sm:$0xff]  ;;  %v258_v31 = vld [vmem:[#allocation7 + $0x8] sm:$0xff]  ;;  %v259_v32 = vld [vmem:[#allocation7 + $0x10] sm:$0xff] }
  0x50   :  { %474 = vmatprep.mubr.msk.f32.mxu0 %vm640_vm0, %v641_v1  ;;  %485 = vmatpush3.bf16.msra.mxu1 %v484_v11  ;;  %v505_v33 = vpack.c.bf16 %v258_v31, %v257_v30  ;;  %v260_v34 = vld [vmem:[#allocation7 + $0x18] sm:$0xff]  ;;  %v261_v36 = vld [vmem:[#allocation7 + $0x20] sm:$0xff]  ;;  %v262_v37 = vld [vmem:[#allocation7 + $0x28] sm:$0xff] }
  0x51   :  { %486 = vmatprep.subr.bf16.mxu1 %v639_v0  ;;  %v508_v35 = vpack.c.bf16 %v260_v34, %v259_v32  ;;  %v511_v38 = vpack.c.bf16 %v262_v37, %v261_v36  ;;  %v263_v39 = vld [vmem:[#allocation7 + $0x30] sm:$0xff]  ;;  %v264_v40 = vld [vmem:[#allocation7 + $0x38] sm:$0xff]  ;;  %v265_v42 = vld [vmem:[#allocation7 + $0x40] sm:$0xff] }
  0x52   :  { %506 = vmatpush3.bf16.msra.mxu0 %v505_v33  ;;  %v514_v41 = vpack.c.bf16 %v264_v40, %v263_v39  ;;  %v266_v43 = vld [vmem:[#allocation7 + $0x48] sm:$0xff]  ;;  %v267_v49 = vld [vmem:[#allocation7 + $0x50] sm:$0xff]  ;;  %v268_v50 = vld [vmem:[#allocation7 + $0x58] sm:$0xff] }
  0x53   :  { %507 = vmatprep.subr.bf16.mxu0 %v639_v0  ;;  %v517_v44 = vpack.c.bf16 %v266_v43, %v265_v42  ;;  %v359_v45 = vld [vmem:[%s773_s2] ss:$0 sm:$0xff]  ;;  %v520_v51 = vpack.c.bf16 %v268_v50, %v267_v49  ;;  %v269_v52 = vld [vmem:[#allocation7 + $0x60] sm:$0xff]  ;;  %v271_v55 = vld [vmem:[#allocation7 + $0x70] sm:$0xff] }
  0x54   :  { %488 = vmatpush3.bf16.msra.mxu1 %v487_v14  ;;  %v270_v53 = vld [vmem:[#allocation7 + $0x68] sm:$0xff]  ;;  %v272_v56 = vld [vmem:[#allocation7 + $0x78] sm:$0xff] }
  0x55   :  { %489 = vmatprep.subr.bf16.mxu1 %v639_v0  ;;  %v523_v54 = vpack.c.bf16 %v270_v53, %v269_v52  ;;  %v526_v57 = vpack.c.bf16 %v272_v56, %v271_v55  ;;  %v361_v58 = vld [vmem:[%s775_s4] ss:$0 sm:$0xff] }
  0x56   :  { %509 = vmatpush3.bf16.msra.mxu0 %v508_v35  ;;  %v362_v63 = vld [vmem:[%s777_s6] ss:$0 sm:$0xff] }
  0x57   :  { %510 = vmatprep.subr.bf16.mxu0 %v639_v0 }
  0x58   :  { %491 = vmatpush3.bf16.msra.mxu1 %v490_v17 }
  0x59   :  { %492 = vmatprep.subr.bf16.mxu1 %v639_v0 }
  0x5a   :  { %512 = vmatpush3.bf16.msra.mxu0 %v511_v38 }
  0x5b   :  { %513 = vmatprep.subr.bf16.mxu0 %v639_v0 }
  0x5c   :  { %494 = vmatpush3.bf16.msra.mxu1 %v493_v20 }
  0x5d   :  { %495 = vmatprep.subr.bf16.mxu1 %v639_v0 }
  0x5e   :  { %515 = vmatpush3.bf16.msra.mxu0 %v514_v41 }
  0x5f   :  { %516 = vmatprep.subr.bf16.mxu0 %v639_v0 }
  0x60   :  { %497 = vmatpush3.bf16.msra.mxu1 %v496_v23 }
  0x61   :  { %498 = vmatprep.subr.bf16.mxu1 %v639_v0 }
  0x62   :  { %518 = vmatpush3.bf16.msra.mxu0 %v517_v44 }
  0x63   :  { %519 = vmatprep.subr.bf16.mxu0 %v639_v0 }
  0x64   :  { %500 = vmatpush3.bf16.msra.mxu1 %v499_v26 }
  0x65   :  { %501 = vmatprep.subr.bf16.mxu1 %v639_v0 }
  0x66   :  { %521 = vmatpush3.bf16.msra.mxu0 %v520_v51 }
  0x67   :  { %522 = vmatprep.subr.bf16.mxu0 %v639_v0 }
  0x68   :  { %503 = vmatpush3.bf16.msra.mxu1 %v502_v29 }
  0x6a   :  { %524 = vmatpush3.bf16.msra.mxu0 %v523_v54 }
  0x6b   :  { %525 = vmatprep.subr.bf16.mxu0 %v639_v0 }
  0x6e   :  { %527 = vmatpush3.bf16.msra.mxu0 %v526_v57 }
 0x122   :  { %v159_v46 = vpop.f32.mrb[0].mxu0 }
 0x123   :  { %v160_v47 = vadd.f32 %v359_v45, %v159_v46  ;;  %v406_v48 = vpop.f32.mrb[1].mxu0 }
 0x125   :  { %440 = vmatmul.mubr.f32.vlgmr.msra.gmra.mrb[0].mxu1 %v160_v47 }
 0x1f8   :  { %v252_v59 = vpop.f32.mrb[0].mxu1 }
 0x1f9   :  { %v253_v60 = vadd.f32 %v361_v58, %v252_v59  ;;  %v441_v61 = vpop.f32.mrb[1].mxu1 }
 0x1fb   :  { %537 = vtanh.f32 %v253_v60 }
 0x205   :  { %v538_v62 = vpop.eup %537 }
 0x206   :  { %475 = vmatmul.mubr.f32.vlgmr.msra.gmra.mrb[2].mxu0 %v538_v62 }
 0x2d9   :  { %v346_v1 = vpop.f32.mrb[2].mxu0 }
 0x2da   :  { %v347_v2 = vadd.f32 %v362_v63, %v346_v1  ;;  %v476_v3 = vpop.f32.mrb[3].mxu0 }
 0x2dc   :  { %351 = vst.msk [vmem:[%s778_s7] sm:$0xff] %vm350_vm2, %v347_v2 }
 0x2dd   :  { %356 = vsyncpa [#allocation3], 1 }
 0x2de   :  { %357 = vsyncpa [#allocation5], 1 }
 0x2df   :  { %358 = vsyncpa [#allocation8], 1 }

// kernel: tpu_custom_call.1
= control target key start
LH: loop header
LB: loop body
LE: loop exit
PB: predicated region body
PF: predicated region fallthrough
CT: control target
= control target key end

     0   :  { %12 = vsyncpa [#allocation3], 0  ;;  %s771_s0 = inlined_call_operand.hbm [shape: f32[8,16], index: 0, kind: input, shape index: {}]   ;;  %s772_s1 = inlined_call_operand.hbm [shape: f32[16,128], index: 1, kind: input, shape index: {}]   ;;  %s773_s2 = inlined_call_operand.vmem [shape: f32[1,128], index: 2, kind: input, shape index: {}]   ;;  %s774_s3 = inlined_call_operand.hbm [shape: f32[128,128], index: 3, kind: input, shape index: {}]   ;;  %s775_s4 = inlined_call_operand.vmem [shape: f32[1,128], index: 4, kind: input, shape index: {}]   ;;  %s776_s5 = inlined_call_operand.hbm [shape: f32[128,128], index: 5, kind: input, shape index: {}]   ;;  %s777_s6 = inlined_call_operand.vmem [shape: f32[1,128], index: 6, kind: input, shape index: {}]   ;;  %s778_s7 = inlined_call_operand.vmem [shape: f32[8,1], index: 7, kind: output, shape index: {}]  }
   0x1   :  { %13 = vsyncpa [#allocation5], 0 }
   0x2   :  { %14 = vsyncpa [#allocation8], 0  ;;  %s633_s24 = smov [#allocation4]   ;;  %s539_s28 = scalar_lea.hbm %s772_s1, 256 }
   0x3   :  { %s30_s25 = sshll.u32 %s633_s24, 4  ;;  %p540_p0 = scmp.ne.s32.totalorder %s772_s1, %s539_s28  ;;  %s31_s25 = int_to_ptr.vmem [resolvable:$true] %s30_s25 }
   0x4   :  { %p543_p1 = scmp.lt.u32.totalorder %s539_s28, %s772_s1 }
   0x6   :  { %p545_p2 = pnand %p543_p1, %p540_p0 }
   0x8   :  { %548 = shalt.err (!%p545_p2)
}
   0x9   :  { %s549_s10 = scalar_lea.vmem %s31_s25, 256  ;;  %p554_p4 = scmp.lt.s32.totalorder %s31_s25, %s31_s25 }
   0xa   :  { %p550_p3 = scmp.ne.s32.totalorder %s31_s25, %s549_s10  ;;  %p555_p5 = scmp.lt.s32.totalorder %s549_s10, %s549_s10 }
   0xc   :  { %p556_p6 = por %p555_p5, %p554_p4 }
   0xe   :  { %p557_p7 = pnand %p556_p6, %p550_p3 }
  0x10   :  { %560 = shalt.err (!%p557_p7)
}
  0x11   :  { %s634_s11 = smov 128   ;;  %s635_s12 = smov 8  }
  0x12   :  { %36 = dma.hbm_to_vmem [thread:$0]  %s772_s1, 256, %s31_s25, [#allocation5], %s634_s11, %s634_s11, %s635_s12  }
  0x13   :  { %s636_s15 = smov [#allocation2]   ;;  %s637_s17 = smov [#allocation6]  }
  0x14   :  { %s21_s16 = sshll.u32 %s636_s15, 4  ;;  %s44_s18 = sshll.u32 %s637_s17, 4  ;;  %s22_s16 = int_to_ptr.vmem [resolvable:$true] %s21_s16  ;;  %s45_s18 = int_to_ptr.vmem [resolvable:$true] %s44_s18 }
  0x15   :  { %s561_s21 = scalar_lea.hbm %s771_s0, 128 }
  0x16   :  { %p562_p8 = scmp.ne.s32.totalorder %s771_s0, %s561_s21  ;;  %p565_p9 = scmp.lt.u32.totalorder %s561_s21, %s771_s0 }
  0x18   :  { %p567_p10 = pnand %p565_p9, %p562_p8 }
  0x1a   :  { %570 = shalt.err (!%p567_p10)
}
  0x1b   :  { %s571_s1 = scalar_lea.vmem %s22_s16, 128  ;;  %p576_p12 = scmp.lt.s32.totalorder %s22_s16, %s22_s16 }
  0x1c   :  { %p572_p11 = scmp.ne.s32.totalorder %s22_s16, %s571_s1  ;;  %p577_p13 = scmp.lt.s32.totalorder %s571_s1, %s571_s1 }
  0x1e   :  { %p578_p0 = por %p577_p13, %p576_p12 }
  0x20   :  { %p579_p1 = pnand %p578_p0, %p572_p11 }
  0x22   :  { %582 = shalt.err (!%p579_p1)
}
  0x23   :  { %24 = dma.hbm_to_vmem [thread:$0]  %s771_s0, 128, %s22_s16, [#allocation3]  }
  0x24   :  { %s583_s30 = scalar_lea.hbm %s774_s3, 2048 }
  0x25   :  { %p584_p2 = scmp.ne.s32.totalorder %s774_s3, %s583_s30  ;;  %p587_p3 = scmp.lt.u32.totalorder %s583_s30, %s774_s3 }
  0x27   :  { %p589_p4 = pnand %p587_p3, %p584_p2 }
  0x29   :  { %592 = shalt.err (!%p589_p4)
}
  0x2a   :  { %s593_s14 = scalar_lea.vmem %s45_s18, 2048  ;;  %p598_p6 = scmp.lt.s32.totalorder %s45_s18, %s45_s18 }
  0x2b   :  { %p594_p5 = scmp.ne.s32.totalorder %s45_s18, %s593_s14  ;;  %p599_p7 = scmp.lt.s32.totalorder %s593_s14, %s593_s14 }
  0x2d   :  { %p600_p8 = por %p599_p7, %p598_p6 }
  0x2f   :  { %p601_p9 = pnand %p600_p8, %p594_p5 }
  0x31   :  { %604 = shalt.err (!%p601_p9)
}
  0x32   :  { %50 = dma.hbm_to_vmem [thread:$0]  %s774_s3, 2048, %s45_s18, [#allocation5], %s634_s11, %s634_s11, %s635_s12  }
  0x33   :  { %s638_s16 = smov [#allocation7]   ;;  %s605_s21 = scalar_lea.hbm %s776_s5, 2048 }
  0x34   :  { %s58_s17 = sshll.u32 %s638_s16, 4  ;;  %p606_p10 = scmp.ne.s32.totalorder %s776_s5, %s605_s21  ;;  %s59_s17 = int_to_ptr.vmem [resolvable:$true] %s58_s17 }
  0x35   :  { %p609_p11 = scmp.lt.u32.totalorder %s605_s21, %s776_s5 }
  0x37   :  { %p611_p12 = pnand %p609_p11, %p606_p10 }
  0x39   :  { %614 = shalt.err (!%p611_p12)
}
  0x3a   :  { %s615_s1 = scalar_lea.vmem %s59_s17, 2048  ;;  %p620_p0 = scmp.lt.s32.totalorder %s59_s17, %s59_s17 }
  0x3b   :  { %p616_p13 = scmp.ne.s32.totalorder %s59_s17, %s615_s1  ;;  %p621_p1 = scmp.lt.s32.totalorder %s615_s1, %s615_s1 }
  0x3d   :  { %p622_p2 = por %p621_p1, %p620_p0 }
  0x3f   :  { %p623_p3 = pnand %p622_p2, %p616_p13 }
  0x41   :  { %626 = shalt.err (!%p623_p3)
}
  0x42   :  { %64 = dma.hbm_to_vmem [thread:$0]  %s776_s5, 2048, %s59_s17, [#allocation8], %s634_s11, %s634_s11, %s635_s12  }
  0x43   :  { %627 = dma.done.wait [#allocation3], 128  }
  0x44   :  { %628 = vsyncadd [#allocation3], 4294967168 }
  0x45   :  { %629 = dma.done.wait [#allocation5], 2304  }
  0x46   :  { %630 = vsyncadd [#allocation5], 4294964992 }
  0x47   :  { %631 = dma.done.wait [#allocation8], 2048  }
  0x48   :  { %632 = vsyncadd [#allocation8], 4294965248  ;;  %v639_v0 = vmov 0.0|0.0   ;;  %vm640_vm0 = vmmov 0   ;;  %v641_v1 = vmov 0.0   ;;  %v80_v2 = vld [vmem:[#allocation4] sm:$0xff] }
  0x49   :  { %477 = vmatprep.subr.bf16.mxu0 %v639_v0  ;;  %404 = vmatprep.mubr.msk.f32.mxu0 %vm640_vm0, %v641_v1  ;;  %v81_v3 = vld [vmem:[#allocation4 + $0x8] sm:$0xff]  ;;  %v163_v5 = vld [vmem:[#allocation6] sm:$0xff]  ;;  %v164_v6 = vld [vmem:[#allocation6 + $0x8] sm:$0xff]  ;;  %vm89_vm1 = vcmask 130048   ;;  %vm350_vm2 = vcmask 7168  }
  0x4a   :  { %480 = vmatprep.subr.bf16.mxu1 %v639_v0  ;;  %439 = vmatprep.mubr.msk.f32.mxu1 %vm640_vm0, %v641_v1  ;;  %v478_v4 = vpack.c.bf16 %v81_v3, %v80_v2  ;;  %v165_v7 = vld [vmem:[#allocation6 + $0x10] sm:$0xff]  ;;  %v481_v8 = vpack.c.bf16 %v164_v6, %v163_v5  ;;  %v166_v9 = vld [vmem:[#allocation6 + $0x18] sm:$0xff]  ;;  %v79_v10 = vld [vmem:[#allocation2] sm:$0xff] }
  0x4b   :  { %v484_v11 = vpack.c.bf16 %v166_v9, %v165_v7  ;;  %v167_v12 = vld [vmem:[#allocation6 + $0x20] sm:$0xff]  ;;  %v168_v13 = vld [vmem:[#allocation6 + $0x28] sm:$0xff]  ;;  %v169_v15 = vld [vmem:[#allocation6 + $0x30] sm:$0xff] }
  0x4c   :  { %479 = vmatpush3.bf16.msra.mxu0 %v478_v4  ;;  %482 = vmatpush3.bf16.msra.mxu1 %v481_v8  ;;  %v487_v14 = vpack.c.bf16 %v168_v13, %v167_v12  ;;  %v170_v16 = vld [vmem:[#allocation6 + $0x38] sm:$0xff]  ;;  %v171_v18 = vld [vmem:[#allocation6 + $0x40] sm:$0xff]  ;;  %v172_v19 = vld [vmem:[#allocation6 + $0x48] sm:$0xff] }
  0x4d   :  { %504 = vmatprep.subr.bf16.mxu0 %v639_v0  ;;  %483 = vmatprep.subr.bf16.mxu1 %v639_v0  ;;  %v490_v17 = vpack.c.bf16 %v170_v16, %v169_v15  ;;  %v493_v20 = vpack.c.bf16 %v172_v19, %v171_v18  ;;  %v173_v21 = vld [vmem:[#allocation6 + $0x50] sm:$0xff]  ;;  %v174_v22 = vld [vmem:[#allocation6 + $0x58] sm:$0xff]  ;;  %v175_v24 = vld [vmem:[#allocation6 + $0x60] sm:$0xff] }
  0x4e   :  { %v496_v23 = vpack.c.bf16 %v174_v22, %v173_v21  ;;  %v176_v25 = vld [vmem:[#allocation6 + $0x68] sm:$0xff]  ;;  %v177_v27 = vld [vmem:[#allocation6 + $0x70] sm:$0xff]  ;;  %v178_v28 = vld [vmem:[#allocation6 + $0x78] sm:$0xff] }
  0x4f   :  { %405 = vmatmul.mubr.msk.f32.vlgmr.msra.gmra.mrb[0].mxu0 %vm89_vm1, %v79_v10  ;;  %v499_v26 = vpack.c.bf16 %v176_v25, %v175_v24  ;;  %v502_v29 = vpack.c.bf16 %v178_v28, %v177_v27  ;;  %v257_v30 = vld [vmem:[#allocation7] sm:$0xff]  ;;  %v258_v31 = vld [vmem:[#allocation7 + $0x8] sm:$0xff]  ;;  %v259_v32 = vld [vmem:[#allocation7 + $0x10] sm:$0xff] }
  0x50   :  { %474 = vmatprep.mubr.msk.f32.mxu0 %vm640_vm0, %v641_v1  ;;  %485 = vmatpush3.bf16.msra.mxu1 %v484_v11  ;;  %v505_v33 = vpack.c.bf16 %v258_v31, %v257_v30  ;;  %v260_v34 = vld [vmem:[#allocation7 + $0x18] sm:$0xff]  ;;  %v261_v36 = vld [vmem:[#allocation7 + $0x20] sm:$0xff]  ;;  %v262_v37 = vld [vmem:[#allocation7 + $0x28] sm:$0xff] }
  0x51   :  { %486 = vmatprep.subr.bf16.mxu1 %v639_v0  ;;  %v508_v35 = vpack.c.bf16 %v260_v34, %v259_v32  ;;  %v511_v38 = vpack.c.bf16 %v262_v37, %v261_v36  ;;  %v263_v39 = vld [vmem:[#allocation7 + $0x30] sm:$0xff]  ;;  %v264_v40 = vld [vmem:[#allocation7 + $0x38] sm:$0xff]  ;;  %v265_v42 = vld [vmem:[#allocation7 + $0x40] sm:$0xff] }
  0x52   :  { %506 = vmatpush3.bf16.msra.mxu0 %v505_v33  ;;  %v514_v41 = vpack.c.bf16 %v264_v40, %v263_v39  ;;  %v266_v43 = vld [vmem:[#allocation7 + $0x48] sm:$0xff]  ;;  %v267_v49 = vld [vmem:[#allocation7 + $0x50] sm:$0xff]  ;;  %v268_v50 = vld [vmem:[#allocation7 + $0x58] sm:$0xff] }
  0x53   :  { %507 = vmatprep.subr.bf16.mxu0 %v639_v0  ;;  %v517_v44 = vpack.c.bf16 %v266_v43, %v265_v42  ;;  %v359_v45 = vld [vmem:[%s773_s2] ss:$0 sm:$0xff]  ;;  %v520_v51 = vpack.c.bf16 %v268_v50, %v267_v49  ;;  %v269_v52 = vld [vmem:[#allocation7 + $0x60] sm:$0xff]  ;;  %v271_v55 = vld [vmem:[#allocation7 + $0x70] sm:$0xff] }
  0x54   :  { %488 = vmatpush3.bf16.msra.mxu1 %v487_v14  ;;  %v270_v53 = vld [vmem:[#allocation7 + $0x68] sm:$0xff]  ;;  %v272_v56 = vld [vmem:[#allocation7 + $0x78] sm:$0xff] }
  0x55   :  { %489 = vmatprep.subr.bf16.mxu1 %v639_v0  ;;  %v523_v54 = vpack.c.bf16 %v270_v53, %v269_v52  ;;  %v526_v57 = vpack.c.bf16 %v272_v56, %v271_v55  ;;  %v361_v58 = vld [vmem:[%s775_s4] ss:$0 sm:$0xff] }
  0x56   :  { %509 = vmatpush3.bf16.msra.mxu0 %v508_v35  ;;  %v362_v63 = vld [vmem:[%s777_s6] ss:$0 sm:$0xff] }
  0x57   :  { %510 = vmatprep.subr.bf16.mxu0 %v639_v0 }
  0x58   :  { %491 = vmatpush3.bf16.msra.mxu1 %v490_v17 }
  0x59   :  { %492 = vmatprep.subr.bf16.mxu1 %v639_v0 }
  0x5a   :  { %512 = vmatpush3.bf16.msra.mxu0 %v511_v38 }
  0x5b   :  { %513 = vmatprep.subr.bf16.mxu0 %v639_v0 }
  0x5c   :  { %494 = vmatpush3.bf16.msra.mxu1 %v493_v20 }
  0x5d   :  { %495 = vmatprep.subr.bf16.mxu1 %v639_v0 }
  0x5e   :  { %515 = vmatpush3.bf16.msra.mxu0 %v514_v41 }
  0x5f   :  { %516 = vmatprep.subr.bf16.mxu0 %v639_v0 }
  0x60   :  { %497 = vmatpush3.bf16.msra.mxu1 %v496_v23 }
  0x61   :  { %498 = vmatprep.subr.bf16.mxu1 %v639_v0 }
  0x62   :  { %518 = vmatpush3.bf16.msra.mxu0 %v517_v44 }
  0x63   :  { %519 = vmatprep.subr.bf16.mxu0 %v639_v0 }
  0x64   :  { %500 = vmatpush3.bf16.msra.mxu1 %v499_v26 }
  0x65   :  { %501 = vmatprep.subr.bf16.mxu1 %v639_v0 }
  0x66   :  { %521 = vmatpush3.bf16.msra.mxu0 %v520_v51 }
  0x67   :  { %522 = vmatprep.subr.bf16.mxu0 %v639_v0 }
  0x68   :  { %503 = vmatpush3.bf16.msra.mxu1 %v502_v29 }
  0x6a   :  { %524 = vmatpush3.bf16.msra.mxu0 %v523_v54 }
  0x6b   :  { %525 = vmatprep.subr.bf16.mxu0 %v639_v0 }
  0x6e   :  { %527 = vmatpush3.bf16.msra.mxu0 %v526_v57 }
 0x122   :  { %v159_v46 = vpop.f32.mrb[0].mxu0 }
 0x123   :  { %v160_v47 = vadd.f32 %v359_v45, %v159_v46  ;;  %v406_v48 = vpop.f32.mrb[1].mxu0 }
 0x125   :  { %440 = vmatmul.mubr.f32.vlgmr.msra.gmra.mrb[0].mxu1 %v160_v47 }
 0x1f8   :  { %v252_v59 = vpop.f32.mrb[0].mxu1 }
 0x1f9   :  { %v253_v60 = vadd.f32 %v361_v58, %v252_v59  ;;  %v441_v61 = vpop.f32.mrb[1].mxu1 }
 0x1fb   :  { %537 = vtanh.f32 %v253_v60 }
 0x205   :  { %v538_v62 = vpop.eup %537 }
 0x206   :  { %475 = vmatmul.mubr.f32.vlgmr.msra.gmra.mrb[2].mxu0 %v538_v62 }
 0x2d9   :  { %v346_v1 = vpop.f32.mrb[2].mxu0 }
 0x2da   :  { %v347_v2 = vadd.f32 %v362_v63, %v346_v1  ;;  %v476_v3 = vpop.f32.mrb[3].mxu0 }
 0x2dc   :  { %351 = vst.msk [vmem:[%s778_s7] sm:$0xff] %vm350_vm2, %v347_v2 }
 0x2dd   :  { %356 = vsyncpa [#allocation3], 1 }
 0x2de   :  { %357 = vsyncpa [#allocation5], 1 }
 0x2df   :  { %358 = vsyncpa [#allocation8], 1 }

</bundles_post_ra>
